<compile_context>
chip_gen: v7x
topology: tpu7x:2x2x1
jax: 0.10.0
libtpu: 0.0.40
codegen_flags: <defaults>
</compile_context>

<pallas_src>
import jax
import jax.numpy as jnp
from jax.experimental import pallas as pl
from jax.experimental.pallas import tpu as pltpu

EPS = 1e-5  # torch.nn.LayerNorm default


def _gelu_tanh(x):
    # TODO(synk): torch F.gelu defaults to the exact erf form; the tanh
    # approximation (max abs dev ~1e-3) is used here for guaranteed Mosaic
    # lowering (tanh goes to the EUP, essentially free next to the matmuls).
    return 0.5 * x * (1.0 + jnp.tanh(
        0.7978845608028654 * (x + 0.044715 * x * x * x)))


# ----------------------------- Pallas kernel ---------------------------------
def _lm_head_kernel(x_ref, wd_ref, bd_ref, g_ref, b_ref, wo_ref, bo_ref,
                    o_ref, h_ref):
    """Fused dense + gelu + LayerNorm + vocab projection.

    Grid = (row_tile i [parallel], vocab_tile j [arbitrary]).
      x_ref : (TM, E)        row tile of tokens     (same block for all j)
      wd/bd : (E, E), (1, E) dense layer            (same block everywhere)
      g/b   : (1, E)         LayerNorm gamma / beta
      wo/bo : (E, TV), (1, TV) vocab-projection tile
      o_ref : (TM, TV)       logits tile (lane-dense, TV multiple of 128)
      h_ref : (TM, E) VMEM scratch: LN'd activation for this row tile.
    """
    # dense -> gelu -> LayerNorm computed once per row tile (j == 0); the
    # VMEM-resident result is reused for every vocab tile.
    @pl.when(pl.program_id(1) == 0)
    def _():
        x = x_ref[...].astype(jnp.float32)                          # (TM, E)
        h = jnp.dot(x, wd_ref[...],
                    preferred_element_type=jnp.float32) + bd_ref[...]
        h = _gelu_tanh(h)
        mean = jnp.mean(h, axis=-1, keepdims=True)
        var = jnp.mean(jnp.square(h - mean), axis=-1, keepdims=True)
        h_ref[...] = ((h - mean) * jax.lax.rsqrt(var + EPS)
                      ) * g_ref[...] + b_ref[...]

    # Vocab projection for this (row tile, vocab tile).
    o_ref[...] = (jnp.dot(h_ref[...], wo_ref[...],
                          preferred_element_type=jnp.float32)
                  + bo_ref[...]).astype(o_ref.dtype)


# ----------------------------- wrapper ----------------------------------------
def _round_up(x, m):
    return (x + m - 1) // m * m


def roberta_lm_head(features, params, *, tm=None, tv=None, masked_tokens=None):
    """features: (..., E) -> logits (..., V).

    TODO(synk): the `masked_tokens` boolean-index row gather is not
    implemented (None path only); it would need PrefetchScalarGridSpec with
    pl.Element row indexing for a data-dependent gather.
    """
    assert masked_tokens is None
    *lead, e = features.shape
    x = features.reshape(-1, e)          # layout-preserving, no transpose
    n = x.shape[0]
    v = params["w_out"].shape[1]

    # Row tile: multiple of 8 (sublane), as big as practical (amortizes the
    # E x V weight stream per row tile), capped at 256 to stay well inside the
    # default VMEM budget even for large E.
    if tm is None:
        tm = min(256, _round_up(n, 8))
    n_pad = _round_up(n, tm)
    if n_pad != n:
        x = jnp.pad(x, ((0, n_pad - n), (0, 0)))

    # Vocab tile: lane-dense (multiple of 128), as wide as practical (<= 512)
    # for unmasked wide stores and good MXU shapes.
    v_pad = _round_up(v, 128)
    if tv is None:
        tv = 128
        for cand in (512, 384, 256):
            if v_pad % cand == 0:
                tv = cand
                break
    assert v_pad % tv == 0, (v_pad, tv)

    w_out = params["w_out"]
    b_out = params["b_out"]
    if v_pad != v:
        w_out = jnp.pad(w_out, ((0, 0), (0, v_pad - v)))
        b_out = jnp.pad(b_out, ((0, 0), (0, v_pad - v)))

    out = pl.pallas_call(
        _lm_head_kernel,
        out_shape=jax.ShapeDtypeStruct((n_pad, v_pad), features.dtype),
        grid=(n_pad // tm, v_pad // tv),
        in_specs=[
            pl.BlockSpec((tm, e), lambda i, j: (i, 0)),    # x row tile
            pl.BlockSpec((e, e), lambda i, j: (0, 0)),     # dense weight
            pl.BlockSpec((1, e), lambda i, j: (0, 0)),     # dense bias
            pl.BlockSpec((1, e), lambda i, j: (0, 0)),     # LN gamma
            pl.BlockSpec((1, e), lambda i, j: (0, 0)),     # LN beta
            pl.BlockSpec((e, tv), lambda i, j: (0, j)),    # vocab weight tile
            pl.BlockSpec((1, tv), lambda i, j: (0, j)),    # vocab bias tile
        ],
        out_specs=pl.BlockSpec((tm, tv), lambda i, j: (i, j)),
        scratch_shapes=[pltpu.VMEM((tm, e), jnp.float32)],
        compiler_params=pltpu.CompilerParams(
            dimension_semantics=("parallel", "arbitrary")),
    )(x, params["wd"], params["bd"], params["ln_g"], params["ln_b"],
      w_out, b_out)

    out = out[:n, :v]
    return out.reshape(*lead, v)


# ----------------------------- parameter init ---------------------------------
def init_params(key, embed_dim, output_dim):
    ks = jax.random.split(key, 3)
    return dict(
        wd=jax.random.normal(ks[0], (embed_dim, embed_dim), jnp.float32) * 0.02,
        bd=jax.random.normal(ks[1], (1, embed_dim), jnp.float32) * 0.02,
        ln_g=jnp.ones((1, embed_dim), jnp.float32),
        ln_b=jnp.zeros((1, embed_dim), jnp.float32),
        # torch stores the tied weight as (output_dim, embed_dim); keep it
        # pre-transposed as (embed_dim, output_dim) so F.linear == x @ w_out.
        w_out=jax.random.normal(ks[2], (embed_dim, output_dim), jnp.float32) * 0.02,
        b_out=jnp.zeros((1, output_dim), jnp.float32),
    )


# ----------------------------- reference ---------------------------------------
def _reference(x, p):
    h = x @ p["wd"] + p["bd"]
    h = _gelu_tanh(h)
    mean = jnp.mean(h, axis=-1, keepdims=True)
    var = jnp.mean(jnp.square(h - mean), axis=-1, keepdims=True)
    h = (h - mean) * jax.lax.rsqrt(var + EPS) * p["ln_g"] + p["ln_b"]
    return h @ p["w_out"] + p["b_out"]


# ----------------------------- main --------------------------------------------
if __name__ == "__main__":
    T, B, E, V = 8, 2, 32, 256          # seq, batch, embed_dim, output_dim
    key = jax.random.PRNGKey(0)
    k_param, k_x = jax.random.split(key)

    params = init_params(k_param, E, V)
    features = jax.random.normal(k_x, (T, B, E), jnp.float32)

    logits = roberta_lm_head(features, params)
    logits = jax.block_until_ready(logits)

    assert logits.shape == (T, B, V), logits.shape
    assert bool(jnp.all(jnp.isfinite(logits)))

    expect = _reference(features.reshape(-1, E), params).reshape(T, B, V)
    assert bool(jnp.allclose(logits, expect, atol=2e-4, rtol=2e-4)), (
        float(jnp.max(jnp.abs(logits - expect))))
    print("KERNEL_OK")
</pallas_src>

<mosaic_0001>
module attributes {stable_mosaic.version = 11 : i64} {
  func.func @_lm_head_kernel(%arg0: i32, %arg1: i32, %arg2: memref<16x32xf32, #tpu.memory_space<vmem>>, %arg3: memref<32x32xf32, #tpu.memory_space<vmem>>, %arg4: memref<1x32xf32, #tpu.memory_space<vmem>>, %arg5: memref<1x32xf32, #tpu.memory_space<vmem>>, %arg6: memref<1x32xf32, #tpu.memory_space<vmem>>, %arg7: memref<32x256xf32, #tpu.memory_space<vmem>>, %arg8: memref<1x256xf32, #tpu.memory_space<vmem>>, %arg9: memref<16x256xf32, #tpu.memory_space<vmem>>, %arg10: memref<16x32xf32, #tpu.memory_space<vmem>>) attributes {dimension_semantics = [#tpu.dimension_semantics<parallel>, #tpu.dimension_semantics<arbitrary>], iteration_bounds = array<i64: 1, 1>, scalar_prefetch = 0 : i64, scratch_operands = 1 : i64, tpu.core_type = #tpu.core_type<tc>, window_params = [{transform_indices = @transform_0, window_bounds = array<i64: 16, 32>}, {pipeline_mode = #tpu.pipeline_mode<synchronous>, transform_indices = @transform_1, window_bounds = array<i64: 32, 32>}, {pipeline_mode = #tpu.pipeline_mode<synchronous>, transform_indices = @transform_2, window_bounds = array<i64: 1, 32>}, {pipeline_mode = #tpu.pipeline_mode<synchronous>, transform_indices = @transform_3, window_bounds = array<i64: 1, 32>}, {pipeline_mode = #tpu.pipeline_mode<synchronous>, transform_indices = @transform_4, window_bounds = array<i64: 1, 32>}, {transform_indices = @transform_5, window_bounds = array<i64: 32, 256>}, {transform_indices = @transform_6, window_bounds = array<i64: 1, 256>}, {transform_indices = @transform_7, window_bounds = array<i64: 16, 256>}]} {
    %c0_i32 = arith.constant 0 : i32
    %0 = arith.cmpi eq, %arg1, %c0_i32 : i32
    %1 = arith.extui %0 : i1 to i32
    %c0_i32_0 = arith.constant 0 : i32
    %2 = arith.cmpi ne, %1, %c0_i32_0 : i32
    scf.if %2 {
      %c0_8 = arith.constant 0 : index
      %c0_9 = arith.constant 0 : index
      %10 = vector.load %arg2[%c0_8, %c0_9] : memref<16x32xf32, #tpu.memory_space<vmem>>, vector<16x32xf32>
      %c0_10 = arith.constant 0 : index
      %c0_11 = arith.constant 0 : index
      %11 = vector.load %arg3[%c0_10, %c0_11] : memref<32x32xf32, #tpu.memory_space<vmem>>, vector<32x32xf32>
      %cst_12 = arith.constant dense<0.000000e+00> : vector<16x32xf32>
      %12 = tpu.matmul %10, %11, %cst_12 {dimension_numbers = #tpu.dot_dimension_numbers<[1], [0], [0], [1], [0, 0, 1, 1], [], []>} : vector<16x32xf32>, vector<32x32xf32>, vector<16x32xf32> -> vector<16x32xf32>
      %c0_13 = arith.constant 0 : index
      %c0_14 = arith.constant 0 : index
      %13 = vector.load %arg4[%c0_13, %c0_14] : memref<1x32xf32, #tpu.memory_space<vmem>>, vector<1x32xf32>
      %14 = vector.broadcast %13 : vector<1x32xf32> to vector<16x32xf32>
      %15 = arith.addf %12, %14 : vector<16x32xf32>
      %cst_15 = arith.constant 5.000000e-01 : f32
      %16 = vector.broadcast %cst_15 : f32 to vector<16x32xf32>
      %17 = arith.mulf %16, %15 : vector<16x32xf32>
      %cst_16 = arith.constant 4.471500e-02 : f32
      %18 = vector.broadcast %cst_16 : f32 to vector<16x32xf32>
      %19 = arith.mulf %18, %15 : vector<16x32xf32>
      %20 = arith.mulf %19, %15 : vector<16x32xf32>
      %21 = arith.mulf %20, %15 : vector<16x32xf32>
      %22 = arith.addf %15, %21 : vector<16x32xf32>
      %cst_17 = arith.constant 0.797884583 : f32
      %23 = vector.broadcast %cst_17 : f32 to vector<16x32xf32>
      %24 = arith.mulf %23, %22 : vector<16x32xf32>
      %25 = math.tanh %24 : vector<16x32xf32>
      %cst_18 = arith.constant 1.000000e+00 : f32
      %26 = vector.broadcast %cst_18 : f32 to vector<16x32xf32>
      %27 = arith.addf %26, %25 : vector<16x32xf32>
      %28 = arith.mulf %17, %27 : vector<16x32xf32>
      %cst_19 = arith.constant dense<0.000000e+00> : vector<16xf32>
      %29 = vector.multi_reduction <add>, %28, %cst_19 [1] : vector<16x32xf32> to vector<16xf32>
      %30 = vector.shape_cast %29 : vector<16xf32> to vector<16x1xf32>
      %cst_20 = arith.constant 3.200000e+01 : f32
      %31 = vector.broadcast %cst_20 : f32 to vector<16x1xf32>
      %32 = arith.divf %30, %31 : vector<16x1xf32>
      %33 = vector.broadcast %32 : vector<16x1xf32> to vector<16x32xf32>
      %34 = arith.subf %28, %33 : vector<16x32xf32>
      %35 = arith.mulf %34, %34 : vector<16x32xf32>
      %cst_21 = arith.constant dense<0.000000e+00> : vector<16xf32>
      %36 = vector.multi_reduction <add>, %35, %cst_21 [1] : vector<16x32xf32> to vector<16xf32>
      %37 = vector.shape_cast %36 : vector<16xf32> to vector<16x1xf32>
      %cst_22 = arith.constant 3.200000e+01 : f32
      %38 = vector.broadcast %cst_22 : f32 to vector<16x1xf32>
      %39 = arith.divf %37, %38 : vector<16x1xf32>
      %40 = vector.broadcast %32 : vector<16x1xf32> to vector<16x32xf32>
      %41 = arith.subf %28, %40 : vector<16x32xf32>
      %cst_23 = arith.constant 9.99999974E-6 : f32
      %42 = vector.broadcast %cst_23 : f32 to vector<16x1xf32>
      %43 = arith.addf %39, %42 : vector<16x1xf32>
      %44 = math.rsqrt %43 : vector<16x1xf32>
      %45 = vector.broadcast %44 : vector<16x1xf32> to vector<16x32xf32>
      %46 = arith.mulf %41, %45 : vector<16x32xf32>
      %c0_24 = arith.constant 0 : index
      %c0_25 = arith.constant 0 : index
      %47 = vector.load %arg5[%c0_24, %c0_25] : memref<1x32xf32, #tpu.memory_space<vmem>>, vector<1x32xf32>
      %48 = vector.broadcast %47 : vector<1x32xf32> to vector<16x32xf32>
      %49 = arith.mulf %46, %48 : vector<16x32xf32>
      %c0_26 = arith.constant 0 : index
      %c0_27 = arith.constant 0 : index
      %50 = vector.load %arg6[%c0_26, %c0_27] : memref<1x32xf32, #tpu.memory_space<vmem>>, vector<1x32xf32>
      %51 = vector.broadcast %50 : vector<1x32xf32> to vector<16x32xf32>
      %52 = arith.addf %49, %51 : vector<16x32xf32>
      %c0_28 = arith.constant 0 : index
      %c0_29 = arith.constant 0 : index
      %53 = vector.load %arg10[%c0_28, %c0_29] : memref<16x32xf32, #tpu.memory_space<vmem>>, vector<16x32xf32>
      tpu.vector_store %arg10[%c0_28, %c0_29], %52 {strides = array<i32>} : memref<16x32xf32, #tpu.memory_space<vmem>>, vector<16x32xf32>,
    } else {
    }
    %c0 = arith.constant 0 : index
    %c0_1 = arith.constant 0 : index
    %3 = vector.load %arg10[%c0, %c0_1] : memref<16x32xf32, #tpu.memory_space<vmem>>, vector<16x32xf32>
    %c0_2 = arith.constant 0 : index
    %c0_3 = arith.constant 0 : index
    %4 = vector.load %arg7[%c0_2, %c0_3] : memref<32x256xf32, #tpu.memory_space<vmem>>, vector<32x256xf32>
    %cst = arith.constant dense<0.000000e+00> : vector<16x256xf32>
    %5 = tpu.matmul %3, %4, %cst {dimension_numbers = #tpu.dot_dimension_numbers<[1], [0], [0], [1], [0, 0, 1, 1], [], []>} : vector<16x32xf32>, vector<32x256xf32>, vector<16x256xf32> -> vector<16x256xf32>
    %c0_4 = arith.constant 0 : index
    %c0_5 = arith.constant 0 : index
    %6 = vector.load %arg8[%c0_4, %c0_5] : memref<1x256xf32, #tpu.memory_space<vmem>>, vector<1x256xf32>
    %7 = vector.broadcast %6 : vector<1x256xf32> to vector<16x256xf32>
    %8 = arith.addf %5, %7 : vector<16x256xf32>
    %c0_6 = arith.constant 0 : index
    %c0_7 = arith.constant 0 : index
    %9 = vector.load %arg9[%c0_6, %c0_7] : memref<16x256xf32, #tpu.memory_space<vmem>>, vector<16x256xf32>
    tpu.vector_store %arg9[%c0_6, %c0_7], %8 {strides = array<i32>} : memref<16x256xf32, #tpu.memory_space<vmem>>, vector<16x256xf32>,
    return
  }
  func.func @transform_0(%arg0: i32, %arg1: i32) -> (i32, i32) {
    %c0_i32 = arith.constant 0 : i32
    %c0_i32_0 = arith.constant 0 : i32
    return %arg0, %c0_i32 : i32, i32
  }
  func.func @transform_1(%arg0: i32, %arg1: i32) -> (i32, i32) {
    %c0_i32 = arith.constant 0 : i32
    %c0_i32_0 = arith.constant 0 : i32
    %c0_i32_1 = arith.constant 0 : i32
    return %c0_i32, %c0_i32_0 : i32, i32
  }
  func.func @transform_2(%arg0: i32, %arg1: i32) -> (i32, i32) {
    %c0_i32 = arith.constant 0 : i32
    %c0_i32_0 = arith.constant 0 : i32
    %c0_i32_1 = arith.constant 0 : i32
    return %c0_i32, %c0_i32_0 : i32, i32
  }
  func.func @transform_3(%arg0: i32, %arg1: i32) -> (i32, i32) {
    %c0_i32 = arith.constant 0 : i32
    %c0_i32_0 = arith.constant 0 : i32
    %c0_i32_1 = arith.constant 0 : i32
    return %c0_i32, %c0_i32_0 : i32, i32
  }
  func.func @transform_4(%arg0: i32, %arg1: i32) -> (i32, i32) {
    %c0_i32 = arith.constant 0 : i32
    %c0_i32_0 = arith.constant 0 : i32
    %c0_i32_1 = arith.constant 0 : i32
    return %c0_i32, %c0_i32_0 : i32, i32
  }
  func.func @transform_5(%arg0: i32, %arg1: i32) -> (i32, i32) {
    %c0_i32 = arith.constant 0 : i32
    %c0_i32_0 = arith.constant 0 : i32
    return %c0_i32, %arg1 : i32, i32
  }
  func.func @transform_6(%arg0: i32, %arg1: i32) -> (i32, i32) {
    %c0_i32 = arith.constant 0 : i32
    %c0_i32_0 = arith.constant 0 : i32
    return %c0_i32, %arg1 : i32, i32
  }
  func.func @transform_7(%arg0: i32, %arg1: i32) -> (i32, i32) {
    %c0_i32 = arith.constant 0 : i32
    return %arg0, %arg1 : i32, i32
  }
}

</mosaic_0001>

<bundles_post_ra>
// kernel: tpu_custom_call.1
= control target key start
LH: loop header
LB: loop body
LE: loop exit
PB: predicated region body
PF: predicated region fallthrough
CT: control target
= control target key end

     0   :  { %12 = vsyncpa [#allocation4], 0  ;;  %s643_s0 = inlined_call_operand.hbm [shape: f32[16,32], index: 0, kind: input, shape index: {}]   ;;  %s644_s1 = inlined_call_operand.hbm [shape: f32[32,32], index: 1, kind: input, shape index: {}]   ;;  %s645_s2 = inlined_call_operand.vmem [shape: f32[1,32], index: 2, kind: input, shape index: {}]   ;;  %s646_s3 = inlined_call_operand.vmem [shape: f32[1,32], index: 3, kind: input, shape index: {}]   ;;  %s647_s4 = inlined_call_operand.vmem [shape: f32[1,32], index: 4, kind: input, shape index: {}]   ;;  %s648_s5 = inlined_call_operand.hbm [shape: f32[32,256], index: 5, kind: input, shape index: {}]   ;;  %s649_s6 = inlined_call_operand.vmem [shape: f32[1,256], index: 6, kind: input, shape index: {}]   ;;  %s650_s7 = inlined_call_operand.hbm [shape: f32[16,256], index: 7, kind: output, shape index: {}]  }
   0x1   :  { %13 = vsyncpa [#allocation7], 0 }
   0x2   :  { %14 = vsyncpa [#allocation5], 0  ;;  %s511_s24 = smov [#allocation6]   ;;  %s512_s26 = smov [#allocation3]  }
   0x3   :  { %s32_s25 = sshll.u32 %s511_s24, 4  ;;  %s20_s27 = sshll.u32 %s512_s26, 4  ;;  %s33_s25 = int_to_ptr.vmem [resolvable:$true] %s32_s25  ;;  %s560_s27 = int_to_ptr.vmem [resolvable:$true] %s20_s27 }
   0x4   :  { %s417_s30 = scalar_lea.hbm %s644_s1, 512 }
   0x5   :  { %p418_p0 = scmp.ne.s32.totalorder %s644_s1, %s417_s30  ;;  %p421_p1 = scmp.lt.u32.totalorder %s417_s30, %s644_s1 }
   0x7   :  { %p423_p2 = pnand %p421_p1, %p418_p0 }
   0x9   :  { %426 = shalt.err (!%p423_p2)
}
   0xa   :  { %s427_s12 = scalar_lea.vmem %s33_s25, 512  ;;  %p432_p4 = scmp.lt.s32.totalorder %s33_s25, %s33_s25 }
   0xb   :  { %p428_p3 = scmp.ne.s32.totalorder %s33_s25, %s427_s12  ;;  %p433_p5 = scmp.lt.s32.totalorder %s427_s12, %s427_s12 }
   0xd   :  { %p434_p6 = por %p433_p5, %p432_p4 }
   0xf   :  { %p435_p7 = pnand %p434_p6, %p428_p3 }
  0x11   :  { %438 = shalt.err (!%p435_p7)
}
  0x12   :  { %s513_s13 = smov 128   ;;  %s514_s14 = smov 8  }
  0x13   :  { %38 = dma.hbm_to_vmem [thread:$0]  %s644_s1, 512, %s33_s25, [#allocation7], %s513_s13, %s513_s13, %s514_s14  }
  0x14   :  { %s439_s19 = scalar_lea.hbm %s643_s0, 256 }
  0x15   :  { %p440_p8 = scmp.ne.s32.totalorder %s643_s0, %s439_s19  ;;  %p443_p9 = scmp.lt.u32.totalorder %s439_s19, %s643_s0 }
  0x17   :  { %p445_p10 = pnand %p443_p9, %p440_p8 }
  0x19   :  { %448 = shalt.err (!%p445_p10)
}
  0x1a   :  { %s449_s24 = scalar_lea.vmem %s560_s27, 256  ;;  %p454_p12 = scmp.lt.s32.totalorder %s560_s27, %s560_s27 }
  0x1b   :  { %p450_p11 = scmp.ne.s32.totalorder %s560_s27, %s449_s24  ;;  %p455_p13 = scmp.lt.s32.totalorder %s449_s24, %s449_s24 }
  0x1d   :  { %p456_p0 = por %p455_p13, %p454_p12 }
  0x1f   :  { %p457_p1 = pnand %p456_p0, %p450_p11 }
  0x21   :  { %460 = shalt.err (!%p457_p1)
}
  0x22   :  { %26 = dma.hbm_to_vmem [thread:$0]  %s643_s0, 256, %s560_s27, [#allocation4], %s513_s13, %s513_s13, %s514_s14  }
  0x23   :  { %s515_s26 = smov [#allocation8]   ;;  %s461_s8 = scalar_lea.hbm %s648_s5, 1024 }
  0x24   :  { %s50_s28 = sshll.u32 %s515_s26, 4  ;;  %p462_p2 = scmp.ne.s32.totalorder %s648_s5, %s461_s8  ;;  %s51_s28 = int_to_ptr.vmem [resolvable:$true] %s50_s28 }
  0x25   :  { %p465_p3 = scmp.lt.u32.totalorder %s461_s8, %s648_s5 }
  0x27   :  { %p467_p4 = pnand %p465_p3, %p462_p2 }
  0x29   :  { %470 = shalt.err (!%p467_p4)
}
  0x2a   :  { %s471_s15 = scalar_lea.vmem %s51_s28, 1024  ;;  %p476_p6 = scmp.lt.s32.totalorder %s51_s28, %s51_s28 }
  0x2b   :  { %p472_p5 = scmp.ne.s32.totalorder %s51_s28, %s471_s15  ;;  %p477_p7 = scmp.lt.s32.totalorder %s471_s15, %s471_s15 }
  0x2d   :  { %p478_p8 = por %p477_p7, %p476_p6 }
  0x2f   :  { %p479_p9 = pnand %p478_p8, %p472_p5 }
  0x31   :  { %482 = shalt.err (!%p479_p9)
}
  0x32   :  { %s516_s0 = smov 256   ;;  %s517_s27 = smov 16  }
  0x33   :  { %56 = dma.hbm_to_vmem [thread:$0]  %s648_s5, 1024, %s51_s28, [#allocation7], %s516_s0, %s516_s0, %s517_s27  }
  0x34   :  { %505 = dma.done.wait [#allocation4], 256  }
  0x35   :  { %506 = vsyncadd [#allocation4], 4294967040 }
  0x36   :  { %507 = dma.done.wait [#allocation7], 1536  }
  0x37   :  { %508 = vsyncadd [#allocation7], 4294965760  ;;  %vm85_vm0 = vcmask 261120   ;;  %v74_v0 = vld [vmem:[#allocation6] sm:$0xff]  ;;  %v75_v1 = vld [vmem:[#allocation6 + $0x8] sm:$0xff]  ;;  %v518_v55 = vmov 0.0  }
  0x38   :  { %v76_v2 = vld [vmem:[#allocation6 + $0x10] sm:$0xff]  ;;  %v384_v3 = vpack.c.bf16 %v75_v1, %v74_v0  ;;  %v77_v4 = vld [vmem:[#allocation6 + $0x18] sm:$0xff]  ;;  %v360_v8 = vld [vmem:[%s645_s2] ss:$0 sm:$0xff]  ;;  %325 = vmatprep.mubr.f32.mxu1 %v518_v55  ;;  %s519_s20 = smov [#allocation9]  }
  0x39   :  { %v72_v5 = vld [vmem:[#allocation3] sm:$0xff]  ;;  %v388_v6 = vpack.c.bf16 %v77_v4, %v76_v2  ;;  %v73_v7 = vld [vmem:[#allocation3 + $0x8] sm:$0xff]  ;;  %v235_v43 = vld [vmem:[#allocation8 + $0x8] sm:$0xff]  ;;  %s347_s21 = sshll.u32 %s519_s20, 4  ;;  %s348_s21 = int_to_ptr.vmem [resolvable:$true] %s347_s21 }
  0x3a   :  { %381 = vmatprep.mubr.msk.f32.mxu0 %vm85_vm0, %v72_v5  ;;  %385 = vmatprep.subr.bf16.mxu0 %v384_v3  ;;  %v237_v44 = vld [vmem:[#allocation8 + $0x18] sm:$0xff]  ;;  %v234_v46 = vld [vmem:[#allocation8] sm:$0xff]  ;;  %v236_v47 = vld [vmem:[#allocation8 + $0x10] sm:$0xff]  ;;  %s483_s22 = scalar_lea.vmem %s348_s21, 512  ;;  %p488_p11 = scmp.lt.s32.totalorder %s348_s21, %s348_s21 }
  0x3b   :  { %387 = vmatpush3.bf16.msra.mxu0 %v384_v3  ;;  %v392_v45 = vpack.c.bf16 %v237_v44, %v235_v43  ;;  %v394_v48 = vpack.c.bf16 %v236_v47, %v234_v46  ;;  %v239_v49 = vld [vmem:[#allocation8 + $0x28] sm:$0xff]  ;;  %v241_v50 = vld [vmem:[#allocation8 + $0x38] sm:$0xff]  ;;  %v238_v52 = vld [vmem:[#allocation8 + $0x20] sm:$0xff]  ;;  %p484_p10 = scmp.ne.s32.totalorder %s348_s21, %s483_s22  ;;  %p489_p12 = scmp.lt.s32.totalorder %s483_s22, %s483_s22 }
  0x3c   :  { %389 = vmatprep.subr.bf16.mxu0 %v388_v6  ;;  %v396_v51 = vpack.c.bf16 %v241_v50, %v239_v49  ;;  %v240_v53 = vld [vmem:[#allocation8 + $0x30] sm:$0xff]  ;;  %v363_v63 = vld [vmem:[%s646_s3] ss:$0 sm:$0xff] }
  0x3d   :  { %393 = vmatprep.subr.bf16.mxu1 %v392_v45  ;;  %v398_v54 = vpack.c.bf16 %v240_v53, %v238_v52  ;;  %v364_v1 = vld [vmem:[%s647_s4] ss:$0 sm:$0xff]  ;;  %p490_p13 = por %p489_p12, %p488_p11 }
  0x3e   :  { %395 = vmatpush1.bf16.msra.mxu1 %v394_v48 }
  0x3f   :  { %391 = vmatpush3.bf16.msra.mxu0 %v388_v6  ;;  %397 = vmatprep.subr.bf16.mxu1 %v396_v51  ;;  %p491_p0 = pnand %p490_p13, %p484_p10 }
  0x42   :  { %382 = vmatmul.mubr.msk.f32.vlgmr.msra.gmra.mrb[0].mxu0 %vm85_vm0, %v73_v7  ;;  %399 = vmatpush1.bf16.msra.mxu1 %v398_v54 }
 0x115   :  { %v383_v9 = vpop.f32.mrb[0].mxu0 }
 0x116   :  { %v164_v10 = vadd.f32 %v383_v9, %v360_v8  ;;  %v158_v11 = vpop.f32.mrb[1].mxu0 }
 0x117   :  { %v159_v12 = vadd.f32 %v360_v8, %v158_v11 }
 0x118   :  { %v170_v13 = vmul.f32 0.044715, %v164_v10  ;;  %v168_v29 = vmul.f32 0.5, %v164_v10 }
 0x119   :  { %v169_v14 = vmul.f32 0.044715, %v159_v12  ;;  %v167_v25 = vmul.f32 0.5, %v159_v12 }
 0x11a   :  { %v172_v15 = vmul.f32 %v170_v13, %v164_v10  ;;  %v242_v13 = vld [vmem:[%s649_s6] sm:$0x3] }
 0x11b   :  { %v171_v16 = vmul.f32 %v169_v14, %v159_v12 }
 0x11c   :  { %v174_v17 = vmul.f32 %v172_v15, %v164_v10 }
 0x11d   :  { %v173_v18 = vmul.f32 %v171_v16, %v159_v12 }
 0x11e   :  { %v176_v19 = vadd.f32 %v174_v17, %v164_v10  ;;  %v244_v10 = vlaneseq }
 0x11f   :  { %v175_v20 = vadd.f32 %v173_v18, %v159_v12 }
 0x120   :  { %v178_v21 = vmul.f32 0.7978846, %v176_v19  ;;  %v245_v11 = vshrl.u32 %v244_v10, 7 }
 0x121   :  { %v177_v22 = vmul.f32 0.7978846, %v175_v20 }
 0x122   :  { %409 = vtanh.f32 %v178_v21  ;;  %v246_v12 = vsub.s32 0, %v245_v11  ;;  %v250_v14 = vsub.s32 1, %v245_v11 }
 0x123   :  { %411 = vtanh.f32 %v177_v22 }
 0x124   :  { %v247_v15 = vrot.slane %v242_v13, %v246_v12  ;;  %v251_v16 = vrot.slane %v242_v13, %v250_v14 }
 0x12c   :  { %v410_v23 = vpop.eup %409 }
 0x12d   :  { %v412_v24 = vpop.eup %411  ;;  %v182_v27 = vadd.f32 1.0, %v410_v23 }
 0x12e   :  { %v181_v26 = vadd.f32 1.0, %v412_v24 }
 0x12f   :  { %v184_v31 = vmul.f32 %v182_v27, %v168_v29 }
 0x130   :  { %v183_v28 = vmul.f32 %v181_v26, %v167_v25 }
 0x131   :  { %v188_v32 = vsel %vm85_vm0, %v184_v31, 0.0 }
 0x132   :  { %v185_v30 = vsel %vm85_vm0, %v183_v28, 0.0 }
 0x133   :  { %186 = vadd.xlane.f32.xlu0 %v185_v30 }
 0x137   :  { %189 = vadd.xlane.f32.xlu0 %v188_v32 }
 0x1c0   :  { %v187_v33 = vpop.xlane.xlu0 %186 }
 0x1c1   :  { %v192_v34 = vmul.f32 0.03125, %v187_v33 }
 0x1c3   :  { %v194_v35 = vsub.f32 %v183_v28, %v192_v34 }
 0x1c4   :  { %v190_v36 = vpop.xlane.xlu0 %189 }
 0x1c5   :  { %v193_v37 = vmul.f32 0.03125, %v190_v36  ;;  %v196_v38 = vmul.f32 %v194_v35, %v194_v35 }
 0x1c7   :  { %v195_v39 = vsub.f32 %v184_v31, %v193_v37  ;;  %v198_v40 = vsel %vm85_vm0, %v196_v38, 0.0 }
 0x1c8   :  { %199 = vadd.xlane.f32.xlu1 %v198_v40 }
 0x1c9   :  { %v197_v41 = vmul.f32 %v195_v39, %v195_v39 }
 0x1cb   :  { %v201_v42 = vsel %vm85_vm0, %v197_v41, 0.0 }
 0x1cc   :  { %202 = vadd.xlane.f32.xlu1 %v201_v42 }
 0x255   :  { %v200_v56 = vpop.xlane.xlu1 %199 }
 0x256   :  { %v204_v57 = vmul.f32 0.03125, %v200_v56 }
 0x258   :  { %v206_v58 = vadd.f32 1e-05, %v204_v57 }
 0x259   :  { %v203_v59 = vpop.xlane.xlu1 %202 }
 0x25a   :  { %413 = vrsqrt.f32 %v206_v58  ;;  %v205_v60 = vmul.f32 0.03125, %v203_v59 }
 0x25c   :  { %v207_v61 = vadd.f32 1e-05, %v205_v60 }
 0x25e   :  { %415 = vrsqrt.f32 %v207_v61 }
 0x264   :  { %v414_v62 = vpop.eup %413 }
 0x265   :  { %v210_v0 = vmul.f32 %v414_v62, %v194_v35 }
 0x267   :  { %v219_v2 = vmul.f32 %v363_v63, %v210_v0 }
 0x268   :  { %v416_v3 = vpop.eup %415 }
 0x269   :  { %v228_v4 = vadd.f32 %v364_v1, %v219_v2  ;;  %v211_v5 = vmul.f32 %v416_v3, %v195_v39 }
 0x26b   :  { %230 = vst.msk [vmem:[#allocation2] sm:$0xff] %vm85_vm0, %v228_v4  ;;  %v220_v6 = vmul.f32 %v363_v63, %v211_v5 }
 0x26d   :  { %v229_v7 = vadd.f32 %v364_v1, %v220_v6 }
 0x26f   :  { %231 = vst.msk [vmem:[#allocation2 + $0x8] sm:$0xff] %vm85_vm0, %v229_v7 }
 0x272   :  { %v232_v8 = vld [vmem:[#allocation2] sm:$0xff] }
 0x273   :  { %365 = vmatmul.mubr.msk.f32.vlgmr.msra.gmra.mrb[0].mxu1 %vm85_vm0, %v232_v8 }
 0x274   :  { %331 = vmatprep.mubr.f32.mxu1 %v518_v55 }
 0x276   :  { %v233_v9 = vld [vmem:[#allocation2 + $0x8] sm:$0xff] }
 0x277   :  { %366 = vmatmul.mubr.msk.f32.gmra.mrb[2].mxu1 %vm85_vm0, %v233_v9 }
 0x346   :  { %v327_v17 = vpop.f32.mrb[0].mxu1 }
 0x347   :  { %v328_v18 = vadd.f32 %v327_v17, %v247_v15  ;;  %v329_v19 = vpop.f32.mrb[1].mxu1 }
 0x348   :  { %v330_v20 = vadd.f32 %v329_v19, %v251_v16 }
 0x349   :  { %338 = vst [vmem:[#allocation9] sm:$0xff] %v328_v18 }
 0x34a   :  { %339 = vst [vmem:[#allocation9 + $0x8] sm:$0xff] %v330_v20  ;;  %v333_v21 = vpop.f32.mrb[2].mxu1 }
 0x34b   :  { %v334_v22 = vadd.f32 %v333_v21, %v247_v15  ;;  %v335_v23 = vpop.f32.mrb[3].mxu1 }
 0x34c   :  { %v336_v24 = vadd.f32 %v335_v23, %v251_v16 }
 0x34d   :  { %340 = vst [vmem:[#allocation9 + $0x10] sm:$0xff] %v334_v22 }
 0x34e   :  { %341 = vst [vmem:[#allocation9 + $0x18] sm:$0xff] %v336_v24 }
 0x34f   :  { %494 = shalt.err (!%p491_p0)
}
 0x350   :  { %s495_s24 = scalar_lea.hbm %s650_s7, 512 }
 0x351   :  { %p496_p1 = scmp.ne.s32.totalorder %s650_s7, %s495_s24  ;;  %p499_p2 = scmp.lt.u32.totalorder %s495_s24, %s650_s7 }
 0x353   :  { %p501_p3 = pnand %p499_p2, %p496_p1 }
 0x355   :  { %504 = shalt.err (!%p501_p3)
}
 0x356   :  { %353 = dma.vmem_to_hbm [thread:$0]  %s348_s21, 512, %s650_s7, [#allocation5], %s516_s0, %s516_s0, %s517_s27  }
 0x357   :  { %509 = dma.done.wait [#allocation5], 512  }
 0x358   :  { %510 = vsyncadd [#allocation5], 4294966784 }
 0x359   :  { %357 = vsyncpa [#allocation4], 1 }
 0x35a   :  { %358 = vsyncpa [#allocation7], 1 }
 0x35b   :  { %359 = vsyncpa [#allocation5], 1 }

</bundles_post_ra>
